<compile_context>
chip_gen: v7x
topology: tpu7x:2x2x1
jax: 0.10.0
libtpu: 0.0.40
codegen_flags: <defaults>
</compile_context>

<pallas_src>
import functools

import numpy as np
import jax
import jax.numpy as jnp
from jax.experimental import pallas as pl
from jax.experimental.pallas import tpu as pltpu

LN_EPS = 1e-5
NEG_INF = -1e9            # finite mask value (safe vs NaN on all-masked rows)


# ----------------------------------------------------------- hw-aware config --

@functools.lru_cache(maxsize=None)
def _hw_config():
    """Generation-aware scoped-VMEM budget and row-tile size."""
    try:
        cap = int(pltpu.get_tpu_info().vmem_capacity_bytes)
    except Exception:
        cap = 64 * 1024 * 1024               # conservative (v7x-sized) fallback
    if cap >= 100 * 1024 * 1024:             # v5e / v6e: 128 MiB physical VMEM
        return {"vmem_limit": 96 * 1024 * 1024, "tile_m": 512}
    return {"vmem_limit": 48 * 1024 * 1024, "tile_m": 256}   # v7x: 64 MiB


def _probe_kernel(x_ref, o_ref):
    o_ref[...] = x_ref[...]


@functools.lru_cache(maxsize=None)
def _weight_pipeline_mode():
    """pl.Buffered(1): grid-invariant weights get a single VMEM buffer (no
    double-buffering).  Probed once so the script degrades gracefully if the
    running JAX build rejects pipeline_mode / buffer_count=1."""
    try:
        mode = pl.Buffered(1)
        out = pl.pallas_call(
            _probe_kernel,
            out_shape=jax.ShapeDtypeStruct((8, 128), jnp.float32),
            grid=(1,),
            in_specs=[pl.BlockSpec((8, 128), lambda i: (0, 0),
                                   pipeline_mode=mode)],
            out_specs=pl.BlockSpec((8, 128), lambda i: (0, 0)),
        )(jnp.zeros((8, 128), jnp.float32))
        jax.block_until_ready(out)
        return mode
    except Exception:
        return None


def _weight_spec(shape):
    """BlockSpec for a grid-invariant (fully resident) weight / bias row."""
    index_map = lambda *_: (0,) * len(shape)
    mode = _weight_pipeline_mode()
    if mode is not None:
        return pl.BlockSpec(shape, index_map, pipeline_mode=mode)
    return pl.BlockSpec(shape, index_map)


def _cparams(n_parallel_axes):
    return pltpu.CompilerParams(
        dimension_semantics=("parallel",) * n_parallel_axes,
        vmem_limit_bytes=_hw_config()["vmem_limit"],
    )


def _m_grid(M):
    """Row-tile size + grid length (full block when M is small)."""
    tile = _hw_config()["tile_m"]
    if M <= tile:
        return M, 1
    return tile, pl.cdiv(M, tile)


def _heads_per_group(n_heads, d_head):
    """Heads handled per attention grid step; group width is 128 lanes when the
    head geometry allows it (production CLIP: d_head=64 -> 2 heads/group)."""
    if 128 % d_head == 0:
        hpg = 128 // d_head
        if hpg <= n_heads and n_heads % hpg == 0:
            return hpg
    return n_heads


def _layernorm_body(x, g, b):
    mu = jnp.mean(x, axis=-1, keepdims=True)
    var = jnp.mean(jnp.square(x - mu), axis=-1, keepdims=True)
    return (x - mu) * jax.lax.rsqrt(var + LN_EPS) * g + b


# ------------------------------------------------------------------ kernels --

def _matmul_kernel(x_ref, w_ref, o_ref):
    # bias-less matmul: bf16 inputs, f32 MXU accumulation
    o_ref[...] = jnp.dot(x_ref[...], w_ref[...],
                         preferred_element_type=jnp.float32).astype(o_ref.dtype)


def matmul_nobias(x, w):
    M, K = x.shape
    N = w.shape[1]
    tm, gm = _m_grid(M)
    return pl.pallas_call(
        _matmul_kernel,
        out_shape=jax.ShapeDtypeStruct((M, N), jnp.bfloat16),
        grid=(gm,),
        in_specs=[pl.BlockSpec((tm, K), lambda i: (i, 0)),
                  _weight_spec((K, N))],
        out_specs=pl.BlockSpec((tm, N), lambda i: (i, 0)),
        compiler_params=_cparams(1),
    )(x, w)


def _add_ln_kernel(a_ref, c_ref, g_ref, b_ref, o_ref):
    x = a_ref[...].astype(jnp.float32) + c_ref[...].astype(jnp.float32)
    o_ref[...] = _layernorm_body(x, g_ref[...], b_ref[...]).astype(o_ref.dtype)


def add_layernorm(a, c, g, b):
    M, D = a.shape
    tm, gm = _m_grid(M)
    return pl.pallas_call(
        _add_ln_kernel,
        out_shape=jax.ShapeDtypeStruct((M, D), jnp.bfloat16),
        grid=(gm,),
        in_specs=[pl.BlockSpec((tm, D), lambda i: (i, 0)),
                  pl.BlockSpec((tm, D), lambda i: (i, 0)),
                  _weight_spec((1, D)),
                  _weight_spec((1, D))],
        out_specs=pl.BlockSpec((tm, D), lambda i: (i, 0)),
        compiler_params=_cparams(1),
    )(a, c, g.reshape(1, D), b.reshape(1, D))


def _ln_qkv_kernel(x_ref, g_ref, b_ref, w_ref, bias_ref, o_ref):
    # LN1 (f32 stats) fused with the concatenated, group-ordered QKV projection.
    x = x_ref[...].astype(jnp.float32)
    xn = _layernorm_body(x, g_ref[...], b_ref[...]).astype(jnp.bfloat16)
    acc = jnp.dot(xn, w_ref[...], preferred_element_type=jnp.float32)
    o_ref[...] = (acc + bias_ref[...]).astype(o_ref.dtype)


def ln_qkv(x, g, b, wqkv, bqkv):
    M, D = x.shape
    N = wqkv.shape[1]                              # 3 * D (group-ordered)
    tm, gm = _m_grid(M)
    return pl.pallas_call(
        _ln_qkv_kernel,
        out_shape=jax.ShapeDtypeStruct((M, N), jnp.bfloat16),
        grid=(gm,),
        in_specs=[pl.BlockSpec((tm, D), lambda i: (i, 0)),
                  _weight_spec((1, D)),
                  _weight_spec((1, D)),
                  _weight_spec((D, N)),
                  _weight_spec((1, N))],
        out_specs=pl.BlockSpec((tm, N), lambda i: (i, 0)),
        compiler_params=_cparams(1),
    )(x, g.reshape(1, D), b.reshape(1, D), wqkv, bqkv.reshape(1, N))


def _attention_kernel(d_head, seq_ref, qkv_ref, o_ref, acc_ref):
    # One (image, head-group) per grid step.  The QKV block holds that group's
    # contiguous [q_g | k_g | v_g] bf16 columns; scale is pre-folded into wq.
    b = pl.program_id(0)
    n_valid = seq_ref[b]                              # scalar from SMEM
    L = qkv_ref.shape[1]
    Wg = o_ref.shape[2]                               # group width = hpg * Dh

    key_idx = jax.lax.broadcasted_iota(jnp.int32, (1, L), 1)
    bias = jnp.where(key_idx < n_valid, 0.0, NEG_INF).astype(jnp.float32)

    # TODO(synk): at very large head counts per group, switch to
    # lax.fori_loop(..., unroll=2) to bound vreg live ranges.
    for h in range(Wg // d_head):                     # static unroll within group
        lo = h * d_head
        qh = qkv_ref[0, :, lo:lo + d_head]                       # bf16 (L, Dh)
        kh = qkv_ref[0, :, Wg + lo:Wg + lo + d_head]             # bf16 (L, Dh)
        vh = qkv_ref[0, :, 2 * Wg + lo:2 * Wg + lo + d_head]     # bf16 (L, Dh)
        s = jax.lax.dot_general(qh, kh, (((1,), (1,)), ((), ())),
                                preferred_element_type=jnp.float32)  # (L, L)
        s = s + bias                                  # (1, L) row, broadcast
        s = s - jnp.max(s, axis=-1, keepdims=True)
        p = jnp.exp(s)
        inv = pl.reciprocal(jnp.sum(p, axis=-1, keepdims=True), approx=True)
        p = (p * inv).astype(jnp.bfloat16)
        acc_ref[:, lo:lo + d_head] = jnp.dot(p, vh,
                                             preferred_element_type=jnp.float32)
    o_ref[0] = acc_ref[...].astype(o_ref.dtype)       # one lane-dense store


def attention(qkv, seq_lens, n_heads, d_head):
    B, L, _ = qkv.shape
    D = n_heads * d_head
    hpg = _heads_per_group(n_heads, d_head)
    G = n_heads // hpg
    Wg = hpg * d_head
    kern = functools.partial(_attention_kernel, d_head)
    return pl.pallas_call(
        kern,
        out_shape=jax.ShapeDtypeStruct((B, L, D), jnp.bfloat16),
        grid_spec=pltpu.PrefetchScalarGridSpec(
            num_scalar_prefetch=1,
            grid=(B, G),
            in_specs=[pl.BlockSpec((1, L, 3 * Wg), lambda b, g, seq: (b, 0, g))],
            out_specs=pl.BlockSpec((1, L, Wg), lambda b, g, seq: (b, 0, g)),
            scratch_shapes=[pltpu.VMEM((L, Wg), jnp.float32)],
        ),
        compiler_params=_cparams(2),
    )(seq_lens, qkv)


def _proj_res_ln_kernel(a_ref, w_ref, bias_ref, r_ref, g_ref, b2_ref,
                        h_ref, n_ref):
    # attention out-projection + residual add + LN2 (two bf16 outputs).
    acc = jnp.dot(a_ref[...], w_ref[...], preferred_element_type=jnp.float32)
    new_h = r_ref[...].astype(jnp.float32) + acc + bias_ref[...]
    h_ref[...] = new_h.astype(h_ref.dtype)
    n_ref[...] = _layernorm_body(new_h, g_ref[...], b2_ref[...]).astype(n_ref.dtype)


def proj_residual_ln(a, w, bias, residual, g, b2):
    M, K = a.shape
    D = w.shape[1]
    tm, gm = _m_grid(M)
    return pl.pallas_call(
        _proj_res_ln_kernel,
        out_shape=(jax.ShapeDtypeStruct((M, D), jnp.bfloat16),
                   jax.ShapeDtypeStruct((M, D), jnp.bfloat16)),
        grid=(gm,),
        in_specs=[pl.BlockSpec((tm, K), lambda i: (i, 0)),
                  _weight_spec((K, D)),
                  _weight_spec((1, D)),
                  pl.BlockSpec((tm, D), lambda i: (i, 0)),
                  _weight_spec((1, D)),
                  _weight_spec((1, D))],
        out_specs=(pl.BlockSpec((tm, D), lambda i: (i, 0)),
                   pl.BlockSpec((tm, D), lambda i: (i, 0))),
        compiler_params=_cparams(1),
    )(a, w, bias.reshape(1, D), residual, g.reshape(1, D), b2.reshape(1, D))


def _mlp_res_kernel(x_ref, w1_ref, b1_ref, w2_ref, b2_ref, r_ref, o_ref):
    h = jnp.dot(x_ref[...], w1_ref[...],
                preferred_element_type=jnp.float32) + b1_ref[...]
    h = h * jax.nn.sigmoid(1.702 * h)            # CLIP quick_gelu (f32)
    y = jnp.dot(h.astype(jnp.bfloat16), w2_ref[...],
                preferred_element_type=jnp.float32) + b2_ref[...]
    o_ref[...] = (r_ref[...].astype(jnp.float32) + y).astype(o_ref.dtype)


def mlp_residual(x, w1, b1, w2, b2, residual):
    M, D = x.shape
    I = w1.shape[1]
    tm, gm = _m_grid(M)
    # TODO(synk): at production D/I (1024/4096) add a K-tiled grid axis over I
    # ("arbitrary") with an f32 accumulator scratch to cut resident weight VMEM.
    return pl.pallas_call(
        _mlp_res_kernel,
        out_shape=jax.ShapeDtypeStruct((M, D), jnp.bfloat16),
        grid=(gm,),
        in_specs=[pl.BlockSpec((tm, D), lambda i: (i, 0)),
                  _weight_spec((D, I)),
                  _weight_spec((1, I)),
                  _weight_spec((I, D)),
                  _weight_spec((1, D)),
                  pl.BlockSpec((tm, D), lambda i: (i, 0))],
        out_specs=pl.BlockSpec((tm, D), lambda i: (i, 0)),
        compiler_params=_cparams(1),
    )(x, w1, b1.reshape(1, I), w2, b2.reshape(1, D), residual)


def _head_kernel(c_ref, x_ref, pg_ref, pb_ref, lg_ref, lb_ref, w_ref, o_ref):
    # post-LN (row-wise, so applied independently to cls and patches) +
    # class-token scaling + last-LN + bias-less output projection.
    cls = _layernorm_body(c_ref[0].astype(jnp.float32), pg_ref[...], pb_ref[...])
    img = _layernorm_body(x_ref[0].astype(jnp.float32), pg_ref[...], pb_ref[...])
    y = _layernorm_body(cls * img, lg_ref[...], lb_ref[...]).astype(jnp.bfloat16)
    o_ref[0] = jnp.dot(y, w_ref[...],
                       preferred_element_type=jnp.float32).astype(o_ref.dtype)


def head_project(cls_tok, patches, post_g, post_b, last_g, last_b, proj_w):
    B, _, D = cls_tok.shape
    Np = patches.shape[1]
    out_dim = proj_w.shape[1]
    # TODO(synk): for v7x megacore with small/odd B, add a second "parallel"
    # grid axis over patch-row tiles.
    return pl.pallas_call(
        _head_kernel,
        out_shape=jax.ShapeDtypeStruct((B, Np, out_dim), jnp.float32),
        grid=(B,),
        in_specs=[pl.BlockSpec((1, 1, D), lambda b: (b, 0, 0)),
                  pl.BlockSpec((1, Np, D), lambda b: (b, 0, 0)),
                  _weight_spec((1, D)),
                  _weight_spec((1, D)),
                  _weight_spec((1, D)),
                  _weight_spec((1, D)),
                  _weight_spec((D, out_dim))],
        out_specs=pl.BlockSpec((1, Np, out_dim), lambda b: (b, 0, 0)),
        compiler_params=_cparams(1),
    )(cls_tok, patches, post_g.reshape(1, D), post_b.reshape(1, D),
      last_g.reshape(1, D), last_b.reshape(1, D), proj_w)


# --------------------------------------------------------------------- glue --

def bilinear_resize(emb, out_h, out_w):
    """PyTorch F.interpolate(mode='bilinear', align_corners=False) for (D,h,w)."""
    _, h0, w0 = emb.shape

    def coords(out_n, in_n):
        scale = in_n / out_n
        src = np.maximum((np.arange(out_n) + 0.5) * scale - 0.5, 0.0)
        i0 = np.minimum(np.floor(src).astype(np.int64), in_n - 1)
        i1 = np.minimum(i0 + 1, in_n - 1)
        frac = (src - i0).astype(np.float32)
        return i0, i1, frac

    y0, y1, fy = coords(out_h, h0)
    x0, x1, fx = coords(out_w, w0)
    v00 = emb[:, y0][:, :, x0]
    v01 = emb[:, y0][:, :, x1]
    v10 = emb[:, y1][:, :, x0]
    v11 = emb[:, y1][:, :, x1]
    fx = jnp.asarray(fx)[None, None, :]
    fy = jnp.asarray(fy)[None, :, None]
    top = v00 * (1.0 - fx) + v01 * fx
    bot = v10 * (1.0 - fx) + v11 * fx
    return top * (1.0 - fy) + bot * fy


def init_params(key, C, P, D, n_layers, inter, out_dim, pos_grid, n_heads):
    keys = iter(jax.random.split(key, 256))

    def nrm(shape, s=0.02):
        return jax.random.normal(next(keys), shape, jnp.float32) * s

    d_head = D // n_heads
    scale = d_head ** -0.5
    hpg = _heads_per_group(n_heads, d_head)
    G = n_heads // hpg
    Wg = hpg * d_head

    params = dict(
        # conv weight flattened (c, ph, pw) -> D, stored bf16 for the MXU
        # TODO(synk): when loading real CLIP weights, use conv_w.reshape(D,-1).T
        patch_w=nrm((C * P * P, D)).astype(jnp.bfloat16),
        class_emb=nrm((D,)),
        class_pos=nrm((D,)),
        patch_pos=nrm((D, pos_grid, pos_grid)),
        pre_g=jnp.ones((D,), jnp.float32), pre_b=jnp.zeros((D,), jnp.float32),
        post_g=jnp.ones((D,), jnp.float32), post_b=jnp.zeros((D,), jnp.float32),
        last_g=jnp.ones((D,), jnp.float32), last_b=jnp.zeros((D,), jnp.float32),
        proj_w=nrm((D, out_dim)).astype(jnp.bfloat16),   # projection, no bias
        layers=[],
    )
    for _ in range(n_layers):
        wq, wk, wv = nrm((D, D)), nrm((D, D)), nrm((D, D))
        bq, bk, bv = nrm((D,)), nrm((D,)), nrm((D,))
        # Fold the attention scale into the Q projection (load-time transform;
        # do the same when converting real CLIP checkpoints).
        wq = wq * scale
        bq = bq * scale
        # Head-group-ordered QKV columns: [q_g | k_g | v_g] per group g, so the
        # attention kernel's per-group BlockSpec slice is contiguous (and
        # 128-lane aligned at production d_head=64).
        wqkv = jnp.concatenate(
            [jnp.concatenate([wq[:, g * Wg:(g + 1) * Wg],
                              wk[:, g * Wg:(g + 1) * Wg],
                              wv[:, g * Wg:(g + 1) * Wg]], axis=1)
             for g in range(G)], axis=1)
        bqkv = jnp.concatenate(
            [jnp.concatenate([bq[g * Wg:(g + 1) * Wg],
                              bk[g * Wg:(g + 1) * Wg],
                              bv[g * Wg:(g + 1) * Wg]])
             for g in range(G)])
        params["layers"].append(dict(
            ln1_g=jnp.ones((D,), jnp.float32), ln1_b=jnp.zeros((D,), jnp.float32),
            wqkv=wqkv.astype(jnp.bfloat16), bqkv=bqkv,
            wo=nrm((D, D)).astype(jnp.bfloat16), bo=nrm((D,)),
            ln2_g=jnp.ones((D,), jnp.float32), ln2_b=jnp.zeros((D,), jnp.float32),
            w_fc1=nrm((D, inter)).astype(jnp.bfloat16), b_fc1=nrm((inter,)),
            w_fc2=nrm((inter, D)).astype(jnp.bfloat16), b_fc2=nrm((D,)),
        ))
    return params


def vision_encoder_forward(images, sizes, params, *, patch, n_heads, out_dim):
    B, C, H, W = images.shape
    D = params["class_emb"].shape[0]
    Hp, Wp = H // patch, W // patch
    Np = Hp * Wp
    L_real = Np + 1
    L = ((L_real + 127) // 128) * 128        # lane-align token count; the
    pad = L - L_real                         # seq-length mask hides padded keys

    # ---------------- VisionEmbeddings ----------------
    # patch embedding: conv(kernel=stride=patch, bias=False) == per-patch matmul
    pt = images.reshape(B, C, Hp, patch, Wp, patch)
    pt = pt.transpose(0, 2, 4, 1, 3, 5).reshape(B * Np, C * patch * patch)
    # TODO(synk): fuse the patch gather into the matmul BlockSpec index_map to
    # remove this XLA-side HBM shuffle at large image/batch sizes.
    x = matmul_nobias(pt.astype(jnp.bfloat16), params["patch_w"])
    x = x.reshape(B, Np, D)                                          # bf16

    new_sizes = [((h - patch) // patch + 1, (w - patch) // patch + 1)
                 for (h, w) in sizes]

    # per-image bilinear interpolation of patch positional embeddings (glue)
    pos_rows = []
    for (h, w) in new_sizes:
        emb = bilinear_resize(params["patch_pos"], h, w)             # (D, h, w)
        full = jnp.zeros((D, Hp, Wp), jnp.float32).at[:, :h, :w].set(emb)
        pos_rows.append(full.reshape(D, Np).T)                       # (Np, D)
    patch_pos = jnp.stack(pos_rows, axis=0)                          # (B, Np, D)
    class_pos = jnp.broadcast_to(params["class_pos"][None, None, :], (B, 1, D))
    pos_emb = jnp.concatenate(
        [class_pos, patch_pos, jnp.zeros((B, pad, D), jnp.float32)],
        axis=1).astype(jnp.bfloat16)                                 # (B, L, D)

    class_tok = jnp.broadcast_to(
        params["class_emb"][None, None, :], (B, 1, D)).astype(jnp.bfloat16)
    tokens = jnp.concatenate(
        [class_tok, x, jnp.zeros((B, pad, D), jnp.bfloat16)], axis=1)  # (B, L, D)

    # per-image valid sequence lengths (mask is built inside the attention kernel)
    seq_lens = jnp.asarray([1 + h * w for (h, w) in new_sizes], jnp.int32)

    # ---------------- pre layernorm (fused with "+ pos_emb") ----------------
    hidden = add_layernorm(tokens.reshape(B * L, D), pos_emb.reshape(B * L, D),
                           params["pre_g"], params["pre_b"])        # (B*L, D) bf16

    # ---------------- CLIP encoder layers ----------------
    Dh = D // n_heads
    for lp in params["layers"]:
        qkv = ln_qkv(hidden, lp["ln1_g"], lp["ln1_b"],
                     lp["wqkv"], lp["bqkv"])                         # (B*L, 3D) bf16
        ctx = attention(qkv.reshape(B, L, 3 * D), seq_lens, n_heads, Dh)
        hidden, h2 = proj_residual_ln(ctx.reshape(B * L, D), lp["wo"], lp["bo"],
                                      hidden, lp["ln2_g"], lp["ln2_b"])
        hidden = mlp_residual(h2, lp["w_fc1"], lp["b_fc1"],
                              lp["w_fc2"], lp["b_fc2"], hidden)
    # TODO(synk): highest-ceiling restructure — fuse ln_qkv + attention +
    # out-projection into one per-image kernel with wqkv/wo resident in VMEM.

    # ---------------- head: post-LN + cls-scale + last-LN + projection ------
    hidden3 = hidden.reshape(B, L, D)
    out = head_project(hidden3[:, :1], hidden3[:, 1:1 + Np],
                       params["post_g"], params["post_b"],
                       params["last_g"], params["last_b"],
                       params["proj_w"])                             # (B, Np, Od)
    Hm = max(h for h, _ in new_sizes)
    Wm = max(w for _, w in new_sizes)
    out = out.reshape(B, Hm, Wm, out_dim).transpose(0, 3, 1, 2)      # NCHW
    return out, new_sizes


if __name__ == "__main__":
    B, C, P = 2, 3, 8
    D, HEADS, INTER, LAYERS, OUT_DIM = 32, 2, 64, 2, 16
    POS_GRID = 4  # learned positional grid (num_patches = 16, num_positions = 17)
    sizes = [(32, 32), (24, 16)]  # per-image (H, W); batch padded to max
    Hmax = max(h for h, _ in sizes)
    Wmax = max(w for _, w in sizes)

    key = jax.random.PRNGKey(0)
    k_img, k_par = jax.random.split(key)
    images = jax.random.normal(k_img, (B, C, Hmax, Wmax), jnp.float32)
    # zero-pad outside each image's true size (Batched3DTensors padding)
    for i, (h, w) in enumerate(sizes):
        m = (jnp.arange(Hmax)[:, None] < h) & (jnp.arange(Wmax)[None, :] < w)
        images = images.at[i].set(images[i] * m.astype(images.dtype))

    params = init_params(k_par, C, P, D, LAYERS, INTER, OUT_DIM, POS_GRID, HEADS)

    out, new_sizes = vision_encoder_forward(images, sizes, params,
                                            patch=P, n_heads=HEADS,
                                            out_dim=OUT_DIM)
    jax.block_until_ready(out)
    assert out.shape == (B, OUT_DIM, Hmax // P, Wmax // P), out.shape
    assert new_sizes == [(4, 4), (3, 2)]
    assert bool(jnp.all(jnp.isfinite(out)))
    print("KERNEL_OK")
</pallas_src>

<mosaic_0001>
module attributes {stable_mosaic.version = 11 : i64} {
  func.func @_probe_kernel(%arg0: i32, %arg1: memref<8x128xf32, #tpu.memory_space<vmem>>, %arg2: memref<8x128xf32, #tpu.memory_space<vmem>>) attributes {dimension_semantics = [#tpu.dimension_semantics<arbitrary>], iteration_bounds = array<i64: 1>, scalar_prefetch = 0 : i64, scratch_operands = 0 : i64, tpu.core_type = #tpu.core_type<tc>, window_params = [{pipeline_mode = #tpu.pipeline_mode<synchronous>, transform_indices = @transform_0, window_bounds = array<i64: 8, 128>}, {pipeline_mode = #tpu.pipeline_mode<synchronous>, transform_indices = @transform_1, window_bounds = array<i64: 8, 128>}]} {
    %c0 = arith.constant 0 : index
    %c0_0 = arith.constant 0 : index
    %0 = vector.load %arg1[%c0, %c0_0] : memref<8x128xf32, #tpu.memory_space<vmem>>, vector<8x128xf32>
    %c0_1 = arith.constant 0 : index
    %c0_2 = arith.constant 0 : index
    %1 = vector.load %arg2[%c0_1, %c0_2] : memref<8x128xf32, #tpu.memory_space<vmem>>, vector<8x128xf32>
    tpu.vector_store %arg2[%c0_1, %c0_2], %0 {strides = array<i32>} : memref<8x128xf32, #tpu.memory_space<vmem>>, vector<8x128xf32>,
    return
  }
  func.func @transform_0(%arg0: i32) -> (i32, i32) {
    %c0_i32 = arith.constant 0 : i32
    %c0_i32_0 = arith.constant 0 : i32
    %c0_i32_1 = arith.constant 0 : i32
    return %c0_i32, %c0_i32_0 : i32, i32
  }
  func.func @transform_1(%arg0: i32) -> (i32, i32) {
    %c0_i32 = arith.constant 0 : i32
    %c0_i32_0 = arith.constant 0 : i32
    %c0_i32_1 = arith.constant 0 : i32
    return %c0_i32, %c0_i32_0 : i32, i32
  }
}

module attributes {stable_mosaic.version = 11 : i64} {
  func.func @_matmul_kernel(%arg0: i32, %arg1: memref<32x192xbf16, #tpu.memory_space<vmem>>, %arg2: memref<192x32xbf16, #tpu.memory_space<vmem>>, %arg3: memref<32x32xbf16, #tpu.memory_space<vmem>>) attributes {dimension_semantics = [#tpu.dimension_semantics<parallel>], iteration_bounds = array<i64: 1>, scalar_prefetch = 0 : i64, scratch_operands = 0 : i64, tpu.core_type = #tpu.core_type<tc>, window_params = [{transform_indices = @transform_0, window_bounds = array<i64: 32, 192>}, {pipeline_mode = #tpu.pipeline_mode<synchronous>, transform_indices = @transform_1, window_bounds = array<i64: 192, 32>}, {transform_indices = @transform_2, window_bounds = array<i64: 32, 32>}]} {
    %c0 = arith.constant 0 : index
    %c0_0 = arith.constant 0 : index
    %0 = vector.load %arg1[%c0, %c0_0] : memref<32x192xbf16, #tpu.memory_space<vmem>>, vector<32x192xbf16>
    %c0_1 = arith.constant 0 : index
    %c0_2 = arith.constant 0 : index
    %1 = vector.load %arg2[%c0_1, %c0_2] : memref<192x32xbf16, #tpu.memory_space<vmem>>, vector<192x32xbf16>
    %cst = arith.constant dense<0.000000e+00> : vector<32x32xf32>
    %2 = tpu.matmul %0, %1, %cst {dimension_numbers = #tpu.dot_dimension_numbers<[1], [0], [0], [1], [0, 0, 1, 1], [], []>} : vector<32x192xbf16>, vector<192x32xbf16>, vector<32x32xf32> -> vector<32x32xf32>
    %3 = arith.truncf %2 : vector<32x32xf32> to vector<32x32xbf16>
    %c0_3 = arith.constant 0 : index
    %c0_4 = arith.constant 0 : index
    %4 = vector.load %arg3[%c0_3, %c0_4] : memref<32x32xbf16, #tpu.memory_space<vmem>>, vector<32x32xbf16>
    tpu.vector_store %arg3[%c0_3, %c0_4], %3 {strides = array<i32>} : memref<32x32xbf16, #tpu.memory_space<vmem>>, vector<32x32xbf16>,
    return
  }
  func.func @transform_0(%arg0: i32) -> (i32, i32) {
    %c0_i32 = arith.constant 0 : i32
    %c0_i32_0 = arith.constant 0 : i32
    return %arg0, %c0_i32 : i32, i32
  }
  func.func @transform_1(%arg0: i32) -> (i32, i32) {
    %c0_i32 = arith.constant 0 : i32
    %c0_i32_0 = arith.constant 0 : i32
    %c0_i32_1 = arith.constant 0 : i32
    return %c0_i32, %c0_i32_0 : i32, i32
  }
  func.func @transform_2(%arg0: i32) -> (i32, i32) {
    %c0_i32 = arith.constant 0 : i32
    %c0_i32_0 = arith.constant 0 : i32
    return %arg0, %c0_i32 : i32, i32
  }
}

</mosaic_0001>

<bundles_post_ra>
// kernel: tpu_custom_call.1
= control target key start
LH: loop header
LB: loop body
LE: loop exit
PB: predicated region body
PF: predicated region fallthrough
CT: control target
= control target key end

     0   :  { %6 = vsyncpa [#allocation3], 0  ;;  %s124_s0 = inlined_call_operand.hbm [shape: f32[8,128], index: 0, kind: input, shape index: {}]   ;;  %s125_s1 = inlined_call_operand.hbm [shape: f32[8,128], index: 1, kind: output, shape index: {}]  }
   0x1   :  { %7 = vsyncpa [#allocation4], 0  ;;  %s88_s6 = smov [#allocation2]   ;;  %s40_s10 = scalar_lea.hbm %s124_s0, 128 }
   0x2   :  { %s14_s7 = sshll.u32 %s88_s6, 4  ;;  %p41_p0 = scmp.ne.s32.totalorder %s124_s0, %s40_s10  ;;  %s15_s7 = int_to_ptr.vmem [resolvable:$true] %s14_s7 }
   0x3   :  { %p44_p1 = scmp.lt.u32.totalorder %s40_s10, %s124_s0 }
   0x5   :  { %p46_p2 = pnand %p44_p1, %p41_p0 }
   0x7   :  { %49 = shalt.err (!%p46_p2)
}
   0x8   :  { %s50_s15 = scalar_lea.vmem %s15_s7, 128  ;;  %p55_p4 = scmp.lt.s32.totalorder %s15_s7, %s15_s7 }
   0x9   :  { %p51_p3 = scmp.ne.s32.totalorder %s15_s7, %s50_s15  ;;  %p56_p5 = scmp.lt.s32.totalorder %s50_s15, %s50_s15 }
   0xb   :  { %p57_p6 = por %p56_p5, %p55_p4 }
   0xd   :  { %p58_p7 = pnand %p57_p6, %p51_p3 }
   0xf   :  { %61 = shalt.err (!%p58_p7)
}
  0x10   :  { %17 = dma.hbm_to_vmem [thread:$0]  %s124_s0, 128, %s15_s7, [#allocation3]  }
  0x11   :  { %84 = dma.done.wait [#allocation3], 128  }
  0x12   :  { %85 = vsyncadd [#allocation3], 4294967168  ;;  %s89_s18 = smov [#allocation5]   ;;  %v21_v0 = vld [vmem:[#allocation2] sm:$0xff] }
  0x13   :  { %s29_s19 = sshll.u32 %s89_s18, 4  ;;  %22 = vst [vmem:[#allocation5] sm:$0xff] %v21_v0  ;;  %s30_s19 = int_to_ptr.vmem [resolvable:$true] %s29_s19 }
  0x14   :  { %s62_s20 = scalar_lea.vmem %s30_s19, 128  ;;  %p67_p9 = scmp.lt.s32.totalorder %s30_s19, %s30_s19 }
  0x15   :  { %p63_p8 = scmp.ne.s32.totalorder %s30_s19, %s62_s20  ;;  %p68_p10 = scmp.lt.s32.totalorder %s62_s20, %s62_s20 }
  0x17   :  { %p69_p11 = por %p68_p10, %p67_p9 }
  0x19   :  { %p70_p12 = pnand %p69_p11, %p63_p8 }
  0x1b   :  { %73 = shalt.err (!%p70_p12)
}
  0x1c   :  { %s74_s23 = scalar_lea.hbm %s125_s1, 128 }
  0x1d   :  { %p75_p13 = scmp.ne.s32.totalorder %s125_s1, %s74_s23  ;;  %p78_p0 = scmp.lt.u32.totalorder %s74_s23, %s125_s1 }
  0x1f   :  { %p80_p1 = pnand %p78_p0, %p75_p13 }
  0x21   :  { %83 = shalt.err (!%p80_p1)
}
  0x22   :  { %32 = dma.vmem_to_hbm [thread:$0]  %s30_s19, 128, %s125_s1, [#allocation4]  }
  0x23   :  { %86 = dma.done.wait [#allocation4], 128  }
  0x24   :  { %87 = vsyncadd [#allocation4], 4294967168 }
  0x25   :  { %36 = vsyncpa [#allocation3], 1 }
  0x26   :  { %37 = vsyncpa [#allocation4], 1 }

// kernel: tpu_custom_call.1
= control target key start
LH: loop header
LB: loop body
LE: loop exit
PB: predicated region body
PF: predicated region fallthrough
CT: control target
= control target key end

     0   :  { %v320_v1 = vmov 0   ;;  %vm131_vm0 = vcmask 523264   ;;  %s403_s0 = inlined_call_operand.vmem [shape: bf16[32,192], index: 0, kind: input, shape index: {}]   ;;  %s404_s1 = inlined_call_operand.vmem [shape: bf16[192,32], index: 1, kind: input, shape index: {}]   ;;  %s405_s2 = inlined_call_operand.hbm [shape: bf16[32,32], index: 2, kind: output, shape index: {}]  }
   0x1   :  { %v278_v0 = vld [vmem:[%s404_s1] sm:$0xff]   ;;  %138 = vmatprep.subr.bf16.mxu0 %v320_v1  ;;  %250 = vmatprep.subr.bf16.mxu1 %v320_v1  ;;  %v279_v2 = vld [vmem:[%s404_s1 + $0x8] sm:$0xff]   ;;  %v280_v3 = vld [vmem:[%s404_s1 + $0x10] sm:$0xff]  }
   0x2   :  { %139 = vmatpush1.bf16.msra.mxu0 %v278_v0  ;;  %262 = vmatpush1.bf16.msra.mxu1 %v278_v0  ;;  %v281_v4 = vld [vmem:[%s404_s1 + $0x18] sm:$0xff]   ;;  %v292_v5 = vld [vmem:[%s403_s0 + $0x4] ss:$8 sps:$4 sm:$0xff]  }
   0x3   :  { %140 = vmatprep.subr.bf16.mxu0 %v320_v1  ;;  %251 = vmatprep.subr.bf16.mxu1 %v320_v1  ;;  %v282_v6 = vld [vmem:[%s404_s1 + $0x20] sm:$0xff]   ;;  %v295_v7 = vld [vmem:[%s403_s0 + $0x14] ss:$8 sps:$4 sm:$0xff]  }
   0x6   :  { %141 = vmatpush1.bf16.msra.mxu0 %v279_v2  ;;  %263 = vmatpush1.bf16.msra.mxu1 %v279_v2 }
   0x7   :  { %142 = vmatprep.subr.bf16.mxu0 %v320_v1  ;;  %252 = vmatprep.subr.bf16.mxu1 %v320_v1 }
   0xa   :  { %143 = vmatpush1.bf16.msra.mxu0 %v280_v3  ;;  %264 = vmatpush1.bf16.msra.mxu1 %v280_v3 }
   0xb   :  { %144 = vmatprep.subr.bf16.mxu0 %v320_v1  ;;  %253 = vmatprep.subr.bf16.mxu1 %v320_v1 }
   0xe   :  { %145 = vmatpush1.bf16.msra.mxu0 %v281_v4  ;;  %265 = vmatpush1.bf16.msra.mxu1 %v281_v4 }
   0xf   :  { %7 = vsyncpa [#allocation3], 0  ;;  %146 = vmatprep.subr.bf16.mxu0 %v320_v1  ;;  %254 = vmatprep.subr.bf16.mxu1 %v320_v1  ;;  %v283_v8 = vld [vmem:[%s404_s1 + $0x28] sm:$0xff]   ;;  %v284_v9 = vld [vmem:[%s404_s1 + $0x30] sm:$0xff]   ;;  %s321_s13 = smov [#allocation2]   ;;  %vm203_vm1 = vcmask 257024  }
  0x10   :  { %240 = vmatprep.mubr.msk.bf16.mxu0 %vm131_vm0, %v292_v5  ;;  %241 = vmatprep.mubr.msk.bf16.mxu1 %vm131_vm0, %v295_v7  ;;  %v285_v10 = vld [vmem:[%s404_s1 + $0x38] sm:$0xff]   ;;  %v286_v11 = vld [vmem:[%s404_s1 + $0x40] sm:$0xff]   ;;  %v287_v12 = vld [vmem:[%s404_s1 + $0x48] sm:$0xff]   ;;  %s213_s14 = sshll.u32 %s321_s13, 4  ;;  %s214_s14 = int_to_ptr.vmem [resolvable:$true] %s213_s14 }
  0x11   :  { %v288_v13 = vld [vmem:[%s404_s1 + $0x50] sm:$0xff]   ;;  %v289_v14 = vld [vmem:[%s404_s1 + $0x58] sm:$0xff]   ;;  %v290_v15 = vld [vmem:[%s403_s0] ss:$8 sps:$4 sm:$0xff]   ;;  %p301_p1 = scmp.lt.s32.totalorder %s214_s14, %s214_s14 }
  0x12   :  { %147 = vmatpush1.bf16.msra.mxu0 %v282_v6  ;;  %266 = vmatpush1.bf16.msra.mxu1 %v282_v6  ;;  %v293_v16 = vld [vmem:[%s403_s0 + $0x10] ss:$8 sps:$4 sm:$0xff]   ;;  %s296_s0 = scalar_lea.vmem %s214_s14, 256 }
  0x13   :  { %148 = vmatprep.subr.bf16.mxu0 %v320_v1  ;;  %255 = vmatprep.subr.bf16.mxu1 %v320_v1  ;;  %p297_p0 = scmp.ne.s32.totalorder %s214_s14, %s296_s0  ;;  %p302_p2 = scmp.lt.s32.totalorder %s296_s0, %s296_s0 }
  0x15   :  { %p303_p3 = por %p302_p2, %p301_p1 }
  0x16   :  { %149 = vmatpush1.bf16.msra.mxu0 %v283_v8  ;;  %267 = vmatpush1.bf16.msra.mxu1 %v283_v8 }
  0x17   :  { %150 = vmatprep.subr.bf16.mxu0 %v320_v1  ;;  %256 = vmatprep.subr.bf16.mxu1 %v320_v1  ;;  %p304_p4 = pnand %p303_p3, %p297_p0 }
  0x1a   :  { %151 = vmatpush1.bf16.msra.mxu0 %v284_v9  ;;  %268 = vmatpush1.bf16.msra.mxu1 %v284_v9 }
  0x1b   :  { %152 = vmatprep.subr.bf16.mxu0 %v320_v1  ;;  %257 = vmatprep.subr.bf16.mxu1 %v320_v1 }
  0x1e   :  { %153 = vmatpush1.bf16.msra.mxu0 %v285_v10  ;;  %269 = vmatpush1.bf16.msra.mxu1 %v285_v10 }
  0x1f   :  { %154 = vmatprep.subr.bf16.mxu0 %v320_v1  ;;  %258 = vmatprep.subr.bf16.mxu1 %v320_v1 }
  0x22   :  { %155 = vmatpush1.bf16.msra.mxu0 %v286_v11  ;;  %270 = vmatpush1.bf16.msra.mxu1 %v286_v11 }
  0x23   :  { %156 = vmatprep.subr.bf16.mxu0 %v320_v1  ;;  %259 = vmatprep.subr.bf16.mxu1 %v320_v1 }
  0x26   :  { %157 = vmatpush1.bf16.msra.mxu0 %v287_v12  ;;  %271 = vmatpush1.bf16.msra.mxu1 %v287_v12 }
  0x27   :  { %158 = vmatprep.subr.bf16.mxu0 %v320_v1  ;;  %260 = vmatprep.subr.bf16.mxu1 %v320_v1 }
  0x2a   :  { %159 = vmatpush1.bf16.msra.mxu0 %v288_v13  ;;  %272 = vmatpush1.bf16.msra.mxu1 %v288_v13 }
  0x2b   :  { %160 = vmatprep.subr.bf16.mxu0 %v320_v1  ;;  %261 = vmatprep.subr.bf16.mxu1 %v320_v1 }
  0x2e   :  { %161 = vmatpush1.bf16.msra.mxu0 %v289_v14  ;;  %273 = vmatpush1.bf16.msra.mxu1 %v289_v14 }
  0x31   :  { %171 = vmatmul.mubr.bf16.vlgmr.msra.gmra.mrb[0].mxu0 %v290_v15  ;;  %179 = vmatmul.mubr.bf16.vlgmr.msra.gmra.mrb[0].mxu1 %v293_v16 }
 0x104   :  { %v172_v17 = vpop.f32.mrb[0].mxu0  ;;  %v180_v18 = vpop.f32.mrb[0].mxu1 }
 0x105   :  { %v246_v19 = vpack.c.bf16 %v172_v17, %v172_v17  ;;  %v248_v20 = vpack.c.bf16 %v180_v18, %v180_v18  ;;  %v174_v21 = vpop.f32.mrb[1].mxu0  ;;  %v182_v22 = vpop.f32.mrb[1].mxu1 }
 0x106   :  { %v175_v23 = vpop.f32.mrb[2].mxu0  ;;  %v183_v24 = vpop.f32.mrb[2].mxu1 }
 0x107   :  { %204 = vst.msk [vmem:[#allocation2] sm:$0xf] %vm203_vm1, %v246_v19  ;;  %206 = vst.msk [vmem:[#allocation2 + $0x8] sm:$0xf] %vm203_vm1, %v248_v20  ;;  %v247_v25 = vpack.c.bf16 %v175_v23, %v175_v23  ;;  %v249_v26 = vpack.c.bf16 %v183_v24, %v183_v24  ;;  %v177_v27 = vpop.f32.mrb[3].mxu0  ;;  %v185_v28 = vpop.f32.mrb[3].mxu1 }
 0x109   :  { %205 = vst.msk [vmem:[#allocation2 + $0x4] sm:$0xf] %vm203_vm1, %v247_v25  ;;  %207 = vst.msk [vmem:[#allocation2 + $0xc] sm:$0xf] %vm203_vm1, %v249_v26 }
 0x10a   :  { %307 = shalt.err (!%p304_p4)
}
 0x10b   :  { %s308_s16 = scalar_lea.hbm %s405_s2, 256 }
 0x10c   :  { %p309_p5 = scmp.ne.s32.totalorder %s405_s2, %s308_s16  ;;  %p312_p6 = scmp.lt.u32.totalorder %s308_s16, %s405_s2 }
 0x10e   :  { %p314_p7 = pnand %p312_p6, %p309_p5 }
 0x110   :  { %317 = shalt.err (!%p314_p7)
}
 0x111   :  { %s322_s21 = smov 64   ;;  %s323_s22 = smov 4  }
 0x112   :  { %219 = dma.vmem_to_hbm [thread:$0]  %s214_s14, 256, %s405_s2, [#allocation3], %s322_s21, %s322_s21, %s323_s22  }
 0x113   :  { %318 = dma.done.wait [#allocation3], 256  }
 0x114   :  { %319 = vsyncadd [#allocation3], 4294967040 }
 0x115   :  { %223 = vsyncpa [#allocation3], 1 }

</bundles_post_ra>
